<compile_context>
chip_gen: v7x
topology: tpu7x:2x2x1
jax: 0.10.0
libtpu: 0.0.40
codegen_flags: <defaults>
</compile_context>

<pallas_src>
import functools

import jax
import jax.numpy as jnp
from jax.experimental import pallas as pl
from jax.experimental.pallas import tpu as pltpu

LANES = 128             # vreg lane width — output last dim stays lane-dense
MAX_TILE_ROWS = 4096    # 4096 x 128 f32 = 2 MiB per block (amortizes step overhead)
MIN_GRID = 2            # keep >= 2 tiles so v7x dual-TC "parallel" sharding engages
SMALL_BATCH_BYPASS = 65536  # below this many elements, plain fused XLA wins


def _round_up(a: int, m: int) -> int:
    return ((a + m - 1) // m) * m


def _choose_tile_rows(rows: int) -> int:
    """Pick a row-tile size: big (amortize per-step overhead), but >= MIN_GRID tiles."""
    if rows <= 8:
        return rows  # single block equal to the full (tiny) extent
    target = _round_up(pl.cdiv(rows, MIN_GRID), 8)   # >= MIN_GRID tiles, sublane-aligned
    return min(MAX_TILE_ROWS, target)


def _linreg_kernel(w_ref, b_ref, x_ref, o_ref):
    # w_ref, b_ref: (1,) scalars in SMEM
    # x_ref, o_ref: (tile_rows, 128) f32 tiles in VMEM
    o_ref[...] = x_ref[...] * w_ref[0] + b_ref[0]   # VPU fused multiply-add, lane-dense


@functools.partial(jax.jit, static_argnames=("force_pallas",))
def manual_linear_regression(x, weight, bias, force_pallas=False):
    """Forward pass of nn.Linear(1, 1): y = x * weight + bias.

    Args:
      x: (batch, 1) float32
      weight: (1, 1) float32 (PyTorch Linear weight, shape (out, in))
      bias: (1,) float32
      force_pallas: run the Pallas kernel even for tiny batches (for testing).
    Returns:
      (batch, 1) float32
    """
    batch = int(x.shape[0])
    n = batch  # total scalar elements (in_features == out_features == 1)

    w_scalar = jnp.asarray(weight, jnp.float32).reshape(())
    b_scalar = jnp.asarray(bias, jnp.float32).reshape(())

    # Small-batch bypass: a single fused XLA elementwise op beats kernel launch
    # + pad/reshape/slice overhead for tiny inputs.
    if n < SMALL_BATCH_BYPASS and not force_pallas:
        return (x.astype(jnp.float32) * w_scalar + b_scalar).reshape(batch, 1)

    x_flat = x.reshape(-1).astype(jnp.float32)

    if n % LANES == 0:
        # Zero-copy fast path: reshape is metadata-only, no pad / no tail slice.
        rows = n // LANES
        total = n
        x2d = x_flat.reshape(rows, LANES)
    else:
        rows = max(pl.cdiv(n, LANES), 1)
        total = rows * LANES
        x2d = jnp.pad(x_flat, (0, total - n)).reshape(rows, LANES)

    tile_rows = _choose_tile_rows(rows)
    grid = (pl.cdiv(rows, tile_rows),)   # ragged last block handled by Pallas masking

    w_s = w_scalar.reshape(1)
    b_s = b_scalar.reshape(1)

    y2d = pl.pallas_call(
        _linreg_kernel,
        out_shape=jax.ShapeDtypeStruct((rows, LANES), jnp.float32),
        grid=grid,
        in_specs=[
            pl.BlockSpec(memory_space=pltpu.SMEM),                # weight scalar
            pl.BlockSpec(memory_space=pltpu.SMEM),                # bias scalar
            pl.BlockSpec((tile_rows, LANES), lambda i: (i, 0)),   # x tile
        ],
        out_specs=pl.BlockSpec((tile_rows, LANES), lambda i: (i, 0)),
        compiler_params=pltpu.CompilerParams(
            dimension_semantics=("parallel",),      # shard tiles across TCs on v7x
            vmem_limit_bytes=32 * 1024 * 1024,      # ~8 MiB used at max tile; headroom
        ),
    )(w_s, b_s, x2d)

    # Restore the (batch, 1) PyTorch layout (strip pad only if any was added).
    if total == n:
        return y2d.reshape(batch, 1)
    return y2d.reshape(-1)[:n].reshape(batch, 1)


if __name__ == "__main__":
    key = jax.random.PRNGKey(0)
    k_x, k_x2, k_x3, k_w, k_b = jax.random.split(key, 5)

    # Deterministic parameter init mirroring nn.Linear(1, 1):
    # uniform(-1/sqrt(in_features), 1/sqrt(in_features)) with in_features = 1.
    weight = jax.random.uniform(k_w, (1, 1), jnp.float32, minval=-1.0, maxval=1.0)
    bias = jax.random.uniform(k_b, (1,), jnp.float32, minval=-1.0, maxval=1.0)

    ok = True

    # Small batch (module-scale input) forced through the Pallas kernel.
    batch = 8
    x = jax.random.normal(k_x, (batch, 1), jnp.float32)
    y = jax.block_until_ready(manual_linear_regression(x, weight, bias, force_pallas=True))
    y_ref = x @ weight.T + bias
    ok &= (y.shape == (batch, 1))
    ok &= bool(jnp.allclose(y, y_ref, atol=1e-6))

    # Same input via the auto path (small-batch XLA bypass) — semantics must match.
    y_auto = jax.block_until_ready(manual_linear_regression(x, weight, bias))
    ok &= bool(jnp.allclose(y_auto, y_ref, atol=1e-6))

    # Non-lane-aligned batch: exercises padding + ragged (cdiv) multi-tile grid.
    batch2 = 3000   # -> 24 rows of 128 lanes, 2 tiles (16 + ragged 8)
    x2 = jax.random.normal(k_x2, (batch2, 1), jnp.float32)
    y2 = jax.block_until_ready(manual_linear_regression(x2, weight, bias, force_pallas=True))
    y2_ref = x2 @ weight.T + bias
    ok &= (y2.shape == (batch2, 1))
    ok &= bool(jnp.allclose(y2, y2_ref, atol=1e-6))

    # Lane-aligned batch: zero-copy (reshape-only) fast path, 2 even tiles.
    batch3 = 4096   # -> 32 rows of 128 lanes
    x3 = jax.random.normal(k_x3, (batch3, 1), jnp.float32)
    y3 = jax.block_until_ready(manual_linear_regression(x3, weight, bias, force_pallas=True))
    y3_ref = x3 @ weight.T + bias
    ok &= (y3.shape == (batch3, 1))
    ok &= bool(jnp.allclose(y3, y3_ref, atol=1e-6))

    assert ok, "mismatch vs reference"
    print("KERNEL_OK")
</pallas_src>

<mosaic_0001>
module attributes {stable_mosaic.version = 11 : i64} {
  func.func @_linreg_kernel(%arg0: i32, %arg1: memref<1xf32, #tpu.memory_space<smem>>, %arg2: memref<1xf32, #tpu.memory_space<smem>>, %arg3: memref<1x128xf32, #tpu.memory_space<vmem>>, %arg4: memref<1x128xf32, #tpu.memory_space<vmem>>) attributes {dimension_semantics = [#tpu.dimension_semantics<parallel>], iteration_bounds = array<i64: 1>, scalar_prefetch = 0 : i64, scratch_operands = 0 : i64, tpu.core_type = #tpu.core_type<tc>, window_params = [{transform_indices = @transform_0, window_bounds = array<i64: 1>}, {transform_indices = @transform_1, window_bounds = array<i64: 1>}, {transform_indices = @transform_2, window_bounds = array<i64: 1, 128>}, {transform_indices = @transform_3, window_bounds = array<i64: 1, 128>}]} {
    %c0 = arith.constant 0 : index
    %c0_0 = arith.constant 0 : index
    %0 = vector.load %arg3[%c0, %c0_0] : memref<1x128xf32, #tpu.memory_space<vmem>>, vector<1x128xf32>
    %c0_1 = arith.constant 0 : index
    %1 = memref.load %arg1[%c0_1] : memref<1xf32, #tpu.memory_space<smem>>
    %2 = vector.broadcast %1 : f32 to vector<1x128xf32>
    %3 = arith.mulf %0, %2 : vector<1x128xf32>
    %c0_2 = arith.constant 0 : index
    %4 = memref.load %arg2[%c0_2] : memref<1xf32, #tpu.memory_space<smem>>
    %5 = vector.broadcast %4 : f32 to vector<1x128xf32>
    %6 = arith.addf %3, %5 : vector<1x128xf32>
    %c0_3 = arith.constant 0 : index
    %c0_4 = arith.constant 0 : index
    %7 = vector.load %arg4[%c0_3, %c0_4] : memref<1x128xf32, #tpu.memory_space<vmem>>, vector<1x128xf32>
    tpu.vector_store %arg4[%c0_3, %c0_4], %6 {strides = array<i32>} : memref<1x128xf32, #tpu.memory_space<vmem>>, vector<1x128xf32>,
    return
  }
  func.func @transform_0(%arg0: i32) -> i32 {
    %c0_i32 = arith.constant 0 : i32
    %c0_i32_0 = arith.constant 0 : i32
    return %c0_i32 : i32
  }
  func.func @transform_1(%arg0: i32) -> i32 {
    %c0_i32 = arith.constant 0 : i32
    %c0_i32_0 = arith.constant 0 : i32
    return %c0_i32 : i32
  }
  func.func @transform_2(%arg0: i32) -> (i32, i32) {
    %c0_i32 = arith.constant 0 : i32
    %c0_i32_0 = arith.constant 0 : i32
    return %arg0, %c0_i32 : i32, i32
  }
  func.func @transform_3(%arg0: i32) -> (i32, i32) {
    %c0_i32 = arith.constant 0 : i32
    %c0_i32_0 = arith.constant 0 : i32
    return %arg0, %c0_i32 : i32, i32
  }
}

</mosaic_0001>

<bundles_post_ra>
// kernel: manual_linear_regression.1
= control target key start
LH: loop header
LB: loop body
LE: loop exit
PB: predicated region body
PF: predicated region fallthrough
CT: control target
= control target key end

     0   :  { %s60_s0 = inlined_call_operand.<no memory space> [shape: f32[1], index: 0, kind: input, shape index: {}]   ;;  %s61_s1 = inlined_call_operand.<no memory space> [shape: f32[1], index: 1, kind: input, shape index: {}]   ;;  %s62_s2 = inlined_call_operand.vmem [shape: f32[1,128], index: 2, kind: input, shape index: {}]   ;;  %s63_s3 = inlined_call_operand.vmem [shape: f32[1,128], index: 3, kind: output, shape index: {}]  }
   0x1   :  { %v16_v0 = vld [vmem:[%s62_s2] sm:$0x1]  ;;  %v18_v1 = vstv %s60_s0  ;;  %v21_v2 = vstv %s61_s1 }
   0x2   :  { %v19_v3 = vmul.f32 %v18_v1, %v16_v0 }
   0x4   :  { %v22_v4 = vadd.f32 %v21_v2, %v19_v3 }
   0x6   :  { %23 = vst [vmem:[%s63_s3] sm:$0x1] %v22_v4 }

</bundles_post_ra>
